<compile_context>
chip_gen: v5e
topology: v5e:2x2
jax: 0.10.0
libtpu: 0.0.40
codegen_flags: <defaults>
</compile_context>

<pallas_src>
import jax
import jax.numpy as jnp
from jax import lax
from jax.experimental import pallas as pl
from jax.experimental.pallas import tpu as pltpu


# ---- Lanczos (g=5, n=6) constants, folded into two rational terms -----------
_G0 = 1.000000000190015
_SQRT_2PI = 2.5066282746310005
_C = (
    76.18009172947146,
    -86.50532032941677,
    24.01409824083091,
    -1.231739572450155,
    0.1208650973866179e-2,
    -0.5395239384953e-5,
)
# c1/(z+1)+c2/(z+2)+c3/(z+3) = ((A2*z + A1)*z + A0) / ((z+1)(z+2)(z+3))
# (all-positive coefficients -> no cancellation for z > 0)
_A2 = _C[0] + _C[1] + _C[2]
_A1 = 5.0 * _C[0] + 4.0 * _C[1] + 3.0 * _C[2]
_A0 = 6.0 * _C[0] + 3.0 * _C[1] + 2.0 * _C[2]
# c4/(z+4)+c5/(z+5)+c6/(z+6) = ((B2*z + B1)*z + B0) / ((z+4)(z+5)(z+6))
# (all-negative coefficients -> no cancellation for z > 0)
_B2 = _C[3] + _C[4] + _C[5]
_B1 = 11.0 * _C[3] + 10.0 * _C[4] + 9.0 * _C[5]
_B0 = 30.0 * _C[3] + 24.0 * _C[4] + 20.0 * _C[5]


def _lgamma_pos(z):
    """log(Gamma(z)) for z > 0 via the Numerical-Recipes Lanczos series.

    The 6-term partial-fraction series (and the trailing /z) is folded into two
    rational terms, so the EUP cost is 2 logs + 2 divisions per call instead of
    2 logs + 7 divisions.  Polynomial work goes to the VPU, which has slack.
    Valid in f32 for 0 < z <~ 4e9 (the z*denominator products stay finite),
    which comfortably covers NB dispersions and count data.
    """
    t = z + 5.5
    pre = (z + 0.5) * jnp.log(t) - t
    da = (z + 1.0) * ((z + 2.0) * (z + 3.0))
    db = (z + 4.0) * ((z + 5.0) * (z + 6.0))
    na = (_A2 * z + _A1) * z + _A0
    nb = (_B2 * z + _B1) * z + _B0
    # ser / z  ==  (G0*da + na) / (z*da)  +  nb / (z*db)
    ser_over_z = (_G0 * da + na) / (z * da) + nb / (z * db)
    return pre + jnp.log(_SQRT_2PI * ser_over_z)


def nb_nll_loss(preds, target, *, tile_n=None, interpret=False):
    """Negative-binomial reconstruction NLL (average=True), scalar output."""
    n, two_m = preds.shape
    assert two_m % 2 == 0, "preds feature dim must be even (chunk into loc/scale)"
    m = two_m // 2
    assert target.shape == (n, m), f"target must be {(n, m)}, got {target.shape}"
    assert m % 128 == 0, "M must be a multiple of 128 for lane-aligned chunk access"

    dtype_bytes = jnp.dtype(preds.dtype).itemsize

    # --- feature tiling (leading "parallel" grid axis).  Prefer grid_m >= 2 so
    #     v7x's two TensorCores split the (EUP-bound) work.
    tile_m = next((c for c in (512, 256, 128) if m % c == 0 and m // c >= 2), m)
    grid_m = m // tile_m

    # --- batch tiling (reduction axis), target ~4 MiB of input per grid step
    if tile_n is None:
        bytes_per_row = 3 * tile_m * dtype_bytes
        tile_n = min(2048, (4 * 1024 * 1024) // bytes_per_row)
    tile_n = max(8, (int(tile_n) // 8) * 8)
    if n <= tile_n:
        tile_n = n            # block == full dim, no (8,128) constraint issue
        grid_n = 1
        mask_tail = False
    else:
        grid_n = pl.cdiv(n, tile_n)
        mask_tail = (n % tile_n) != 0

    def kernel(loc_ref, scale_ref, x_ref, out_ref):
        k = pl.program_id(1)

        @pl.when(k == 0)
        def _():
            out_ref[...] = jnp.zeros_like(out_ref)

        loc = loc_ref[...].astype(jnp.float32)
        scale = scale_ref[...].astype(jnp.float32)
        x = x_ref[...].astype(jnp.float32)

        eta_loc = jnp.log(loc)
        eta_scale = jnp.log(scale)
        log_r_plus_mu = jnp.log(scale + loc)

        ll = _lgamma_pos(scale + x)
        ll = ll - _lgamma_pos(x + 1.0)
        ll = ll - _lgamma_pos(scale)
        ll = ll + x * (eta_loc - log_r_plus_mu) + scale * (eta_scale - log_r_plus_mu)
        ll = jnp.clip(ll, -300.0, 300.0)
        neg_ll = -ll

        if mask_tail:
            # Zero out rows past N in the last (partial) batch tile.
            rows = k * tile_n + lax.broadcasted_iota(jnp.int32, neg_ll.shape, 0)
            neg_ll = jnp.where(rows < n, neg_ll, 0.0)

        # per-feature column sums, accumulated in the resident f32 output block
        out_ref[...] += jnp.sum(neg_ll, axis=0, keepdims=True)

    colsum = pl.pallas_call(
        kernel,
        out_shape=jax.ShapeDtypeStruct((1, m), jnp.float32),
        grid_spec=pltpu.PrefetchScalarGridSpec(
            num_scalar_prefetch=0,
            grid=(grid_m, grid_n),
            in_specs=[
                # loc: first M columns of preds
                pl.BlockSpec((tile_n, tile_m), lambda j, k: (k, j)),
                # scale: second M columns of preds (block offset grid_m along lanes)
                pl.BlockSpec((tile_n, tile_m), lambda j, k: (k, grid_m + j)),
                # target counts
                pl.BlockSpec((tile_n, tile_m), lambda j, k: (k, j)),
            ],
            out_specs=pl.BlockSpec((1, tile_m), lambda j, k: (0, j)),
        ),
        compiler_params=pltpu.CompilerParams(
            dimension_semantics=("parallel", "arbitrary"),
            vmem_limit_bytes=32 * 1024 * 1024,
        ),
        cost_estimate=pl.CostEstimate(
            flops=110 * n * m,
            transcendentals=15 * n * m,
            bytes_accessed=3 * n * m * dtype_bytes + m * 4,
        ),
        interpret=interpret,
    )(preds, preds, target)

    # TODO(synk): average=False branch (.sum(dim=1).sum(dim=1)) only applies to
    # 3-D inputs in the reference module and is not implemented here.
    total = jnp.sum(colsum)
    return (total / (n * m)).astype(preds.dtype)


def nb_nll_ref(preds, target):
    """Pure-JAX reference (uses XLA's lgamma)."""
    m = preds.shape[1] // 2
    loc, scale = preds[:, :m], preds[:, m:]
    x = target
    eta_loc = jnp.log(loc)
    eta_scale = jnp.log(scale)
    log_r_plus_mu = jnp.log(scale + loc)
    ll = lax.lgamma(scale + x)
    ll = ll - lax.lgamma(x + 1.0)
    ll = ll - lax.lgamma(scale)
    ll = ll + x * (eta_loc - log_r_plus_mu) + scale * (eta_scale - log_r_plus_mu)
    ll = jnp.clip(ll, -300.0, 300.0)
    return jnp.mean(-ll)


if __name__ == "__main__":
    key = jax.random.PRNGKey(0)
    k1, k2, k3 = jax.random.split(key, 3)

    # Small shapes; N=40 with tile_n=16 exercises multi-step reduction + tail mask.
    N, M = 40, 128
    loc = jax.nn.softplus(jax.random.normal(k1, (N, M), dtype=jnp.float32)) + 1e-3
    scale = jax.nn.softplus(jax.random.normal(k2, (N, M), dtype=jnp.float32)) + 1e-3
    preds = jnp.concatenate([loc, scale], axis=1)                       # (N, 2M)
    target = jax.random.poisson(k3, 3.0, (N, M)).astype(jnp.float32)    # counts

    ref = nb_nll_ref(preds, target)

    # Multi-step reduction with a partial tail tile.
    out = jax.block_until_ready(nb_nll_loss(preds, target, tile_n=16))
    assert out.shape == ()
    assert jnp.allclose(out, ref, rtol=1e-3, atol=1e-3), (out, ref)

    # Default tiling (single reduction step, block == full batch dim).
    out2 = jax.block_until_ready(nb_nll_loss(preds, target))
    assert jnp.allclose(out2, ref, rtol=1e-3, atol=1e-3), (out2, ref)

    print("KERNEL_OK")
</pallas_src>

<mosaic_0001>
module attributes {stable_mosaic.version = 11 : i64} {
  func.func @kernel(%arg0: i32, %arg1: i32, %arg2: memref<16x128xf32, #tpu.memory_space<vmem>>, %arg3: memref<16x128xf32, #tpu.memory_space<vmem>>, %arg4: memref<16x128xf32, #tpu.memory_space<vmem>>, %arg5: memref<1x128xf32, #tpu.memory_space<vmem>>) attributes {dimension_semantics = [#tpu.dimension_semantics<parallel>, #tpu.dimension_semantics<arbitrary>], iteration_bounds = array<i64: 1, 3>, scalar_prefetch = 0 : i64, scratch_operands = 0 : i64, tpu.core_type = #tpu.core_type<tc>, window_params = [{transform_indices = @transform_0, window_bounds = array<i64: 16, 128>}, {transform_indices = @transform_1, window_bounds = array<i64: 16, 128>}, {transform_indices = @transform_2, window_bounds = array<i64: 16, 128>}, {transform_indices = @transform_3, window_bounds = array<i64: 1, 128>}]} {
    %c0_i32 = arith.constant 0 : i32
    %0 = arith.cmpi eq, %arg1, %c0_i32 : i32
    %1 = arith.extui %0 : i1 to i32
    %c0_i32_0 = arith.constant 0 : i32
    %2 = arith.cmpi ne, %1, %c0_i32_0 : i32
    scf.if %2 {
      %cst_63 = arith.constant 0.000000e+00 : f32
      %187 = vector.broadcast %cst_63 : f32 to vector<1x128xf32>
      %c0_64 = arith.constant 0 : index
      %c0_65 = arith.constant 0 : index
      %188 = vector.load %arg5[%c0_64, %c0_65] : memref<1x128xf32, #tpu.memory_space<vmem>>, vector<1x128xf32>
      tpu.vector_store %arg5[%c0_64, %c0_65], %187 {strides = array<i32>} : memref<1x128xf32, #tpu.memory_space<vmem>>, vector<1x128xf32>,
    } else {
    }
    %c0 = arith.constant 0 : index
    %c0_1 = arith.constant 0 : index
    %3 = vector.load %arg2[%c0, %c0_1] : memref<16x128xf32, #tpu.memory_space<vmem>>, vector<16x128xf32>
    %c0_2 = arith.constant 0 : index
    %c0_3 = arith.constant 0 : index
    %4 = vector.load %arg3[%c0_2, %c0_3] : memref<16x128xf32, #tpu.memory_space<vmem>>, vector<16x128xf32>
    %c0_4 = arith.constant 0 : index
    %c0_5 = arith.constant 0 : index
    %5 = vector.load %arg4[%c0_4, %c0_5] : memref<16x128xf32, #tpu.memory_space<vmem>>, vector<16x128xf32>
    %6 = math.log %3 : vector<16x128xf32>
    %7 = math.log %4 : vector<16x128xf32>
    %8 = arith.addf %4, %3 : vector<16x128xf32>
    %9 = math.log %8 : vector<16x128xf32>
    %10 = arith.addf %4, %5 : vector<16x128xf32>
    %cst = arith.constant 5.500000e+00 : f32
    %11 = vector.broadcast %cst : f32 to vector<16x128xf32>
    %12 = arith.addf %10, %11 : vector<16x128xf32>
    %cst_6 = arith.constant 5.000000e-01 : f32
    %13 = vector.broadcast %cst_6 : f32 to vector<16x128xf32>
    %14 = arith.addf %10, %13 : vector<16x128xf32>
    %15 = math.log %12 : vector<16x128xf32>
    %16 = arith.mulf %14, %15 : vector<16x128xf32>
    %17 = arith.subf %16, %12 : vector<16x128xf32>
    %cst_7 = arith.constant 1.000000e+00 : f32
    %18 = vector.broadcast %cst_7 : f32 to vector<16x128xf32>
    %19 = arith.addf %10, %18 : vector<16x128xf32>
    %cst_8 = arith.constant 2.000000e+00 : f32
    %20 = vector.broadcast %cst_8 : f32 to vector<16x128xf32>
    %21 = arith.addf %10, %20 : vector<16x128xf32>
    %cst_9 = arith.constant 3.000000e+00 : f32
    %22 = vector.broadcast %cst_9 : f32 to vector<16x128xf32>
    %23 = arith.addf %10, %22 : vector<16x128xf32>
    %24 = arith.mulf %21, %23 : vector<16x128xf32>
    %25 = arith.mulf %19, %24 : vector<16x128xf32>
    %cst_10 = arith.constant 4.000000e+00 : f32
    %26 = vector.broadcast %cst_10 : f32 to vector<16x128xf32>
    %27 = arith.addf %10, %26 : vector<16x128xf32>
    %cst_11 = arith.constant 5.000000e+00 : f32
    %28 = vector.broadcast %cst_11 : f32 to vector<16x128xf32>
    %29 = arith.addf %10, %28 : vector<16x128xf32>
    %cst_12 = arith.constant 6.000000e+00 : f32
    %30 = vector.broadcast %cst_12 : f32 to vector<16x128xf32>
    %31 = arith.addf %10, %30 : vector<16x128xf32>
    %32 = arith.mulf %29, %31 : vector<16x128xf32>
    %33 = arith.mulf %27, %32 : vector<16x128xf32>
    %cst_13 = arith.constant 13.6888695 : f32
    %34 = vector.broadcast %cst_13 : f32 to vector<16x128xf32>
    %35 = arith.mulf %34, %10 : vector<16x128xf32>
    %cst_14 = arith.constant 106.921471 : f32
    %36 = vector.broadcast %cst_14 : f32 to vector<16x128xf32>
    %37 = arith.addf %35, %36 : vector<16x128xf32>
    %38 = arith.mulf %37, %10 : vector<16x128xf32>
    %cst_15 = arith.constant 245.592789 : f32
    %39 = vector.broadcast %cst_15 : f32 to vector<16x128xf32>
    %40 = arith.addf %38, %39 : vector<16x128xf32>
    %cst_16 = arith.constant -1.23053634 : f32
    %41 = vector.broadcast %cst_16 : f32 to vector<16x128xf32>
    %42 = arith.mulf %41, %10 : vector<16x128xf32>
    %cst_17 = arith.constant -13.537097 : f32
    %43 = vector.broadcast %cst_17 : f32 to vector<16x128xf32>
    %44 = arith.addf %42, %43 : vector<16x128xf32>
    %45 = arith.mulf %44, %10 : vector<16x128xf32>
    %cst_18 = arith.constant -36.9232864 : f32
    %46 = vector.broadcast %cst_18 : f32 to vector<16x128xf32>
    %47 = arith.addf %45, %46 : vector<16x128xf32>
    %cst_19 = arith.constant 1.000000e+00 : f32
    %48 = vector.broadcast %cst_19 : f32 to vector<16x128xf32>
    %49 = arith.mulf %48, %25 : vector<16x128xf32>
    %50 = arith.addf %49, %40 : vector<16x128xf32>
    %51 = arith.mulf %10, %25 : vector<16x128xf32>
    %52 = arith.divf %50, %51 : vector<16x128xf32>
    %53 = arith.mulf %10, %33 : vector<16x128xf32>
    %54 = arith.divf %47, %53 : vector<16x128xf32>
    %55 = arith.addf %52, %54 : vector<16x128xf32>
    %cst_20 = arith.constant 2.50662827 : f32
    %56 = vector.broadcast %cst_20 : f32 to vector<16x128xf32>
    %57 = arith.mulf %56, %55 : vector<16x128xf32>
    %58 = math.log %57 : vector<16x128xf32>
    %59 = arith.addf %17, %58 : vector<16x128xf32>
    %cst_21 = arith.constant 1.000000e+00 : f32
    %60 = vector.broadcast %cst_21 : f32 to vector<16x128xf32>
    %61 = arith.addf %5, %60 : vector<16x128xf32>
    %cst_22 = arith.constant 5.500000e+00 : f32
    %62 = vector.broadcast %cst_22 : f32 to vector<16x128xf32>
    %63 = arith.addf %61, %62 : vector<16x128xf32>
    %cst_23 = arith.constant 5.000000e-01 : f32
    %64 = vector.broadcast %cst_23 : f32 to vector<16x128xf32>
    %65 = arith.addf %61, %64 : vector<16x128xf32>
    %66 = math.log %63 : vector<16x128xf32>
    %67 = arith.mulf %65, %66 : vector<16x128xf32>
    %68 = arith.subf %67, %63 : vector<16x128xf32>
    %cst_24 = arith.constant 1.000000e+00 : f32
    %69 = vector.broadcast %cst_24 : f32 to vector<16x128xf32>
    %70 = arith.addf %61, %69 : vector<16x128xf32>
    %cst_25 = arith.constant 2.000000e+00 : f32
    %71 = vector.broadcast %cst_25 : f32 to vector<16x128xf32>
    %72 = arith.addf %61, %71 : vector<16x128xf32>
    %cst_26 = arith.constant 3.000000e+00 : f32
    %73 = vector.broadcast %cst_26 : f32 to vector<16x128xf32>
    %74 = arith.addf %61, %73 : vector<16x128xf32>
    %75 = arith.mulf %72, %74 : vector<16x128xf32>
    %76 = arith.mulf %70, %75 : vector<16x128xf32>
    %cst_27 = arith.constant 4.000000e+00 : f32
    %77 = vector.broadcast %cst_27 : f32 to vector<16x128xf32>
    %78 = arith.addf %61, %77 : vector<16x128xf32>
    %cst_28 = arith.constant 5.000000e+00 : f32
    %79 = vector.broadcast %cst_28 : f32 to vector<16x128xf32>
    %80 = arith.addf %61, %79 : vector<16x128xf32>
    %cst_29 = arith.constant 6.000000e+00 : f32
    %81 = vector.broadcast %cst_29 : f32 to vector<16x128xf32>
    %82 = arith.addf %61, %81 : vector<16x128xf32>
    %83 = arith.mulf %80, %82 : vector<16x128xf32>
    %84 = arith.mulf %78, %83 : vector<16x128xf32>
    %cst_30 = arith.constant 13.6888695 : f32
    %85 = vector.broadcast %cst_30 : f32 to vector<16x128xf32>
    %86 = arith.mulf %85, %61 : vector<16x128xf32>
    %cst_31 = arith.constant 106.921471 : f32
    %87 = vector.broadcast %cst_31 : f32 to vector<16x128xf32>
    %88 = arith.addf %86, %87 : vector<16x128xf32>
    %89 = arith.mulf %88, %61 : vector<16x128xf32>
    %cst_32 = arith.constant 245.592789 : f32
    %90 = vector.broadcast %cst_32 : f32 to vector<16x128xf32>
    %91 = arith.addf %89, %90 : vector<16x128xf32>
    %cst_33 = arith.constant -1.23053634 : f32
    %92 = vector.broadcast %cst_33 : f32 to vector<16x128xf32>
    %93 = arith.mulf %92, %61 : vector<16x128xf32>
    %cst_34 = arith.constant -13.537097 : f32
    %94 = vector.broadcast %cst_34 : f32 to vector<16x128xf32>
    %95 = arith.addf %93, %94 : vector<16x128xf32>
    %96 = arith.mulf %95, %61 : vector<16x128xf32>
    %cst_35 = arith.constant -36.9232864 : f32
    %97 = vector.broadcast %cst_35 : f32 to vector<16x128xf32>
    %98 = arith.addf %96, %97 : vector<16x128xf32>
    %cst_36 = arith.constant 1.000000e+00 : f32
    %99 = vector.broadcast %cst_36 : f32 to vector<16x128xf32>
    %100 = arith.mulf %99, %76 : vector<16x128xf32>
    %101 = arith.addf %100, %91 : vector<16x128xf32>
    %102 = arith.mulf %61, %76 : vector<16x128xf32>
    %103 = arith.divf %101, %102 : vector<16x128xf32>
    %104 = arith.mulf %61, %84 : vector<16x128xf32>
    %105 = arith.divf %98, %104 : vector<16x128xf32>
    %106 = arith.addf %103, %105 : vector<16x128xf32>
    %cst_37 = arith.constant 2.50662827 : f32
    %107 = vector.broadcast %cst_37 : f32 to vector<16x128xf32>
    %108 = arith.mulf %107, %106 : vector<16x128xf32>
    %109 = math.log %108 : vector<16x128xf32>
    %110 = arith.addf %68, %109 : vector<16x128xf32>
    %111 = arith.subf %59, %110 : vector<16x128xf32>
    %cst_38 = arith.constant 5.500000e+00 : f32
    %112 = vector.broadcast %cst_38 : f32 to vector<16x128xf32>
    %113 = arith.addf %4, %112 : vector<16x128xf32>
    %cst_39 = arith.constant 5.000000e-01 : f32
    %114 = vector.broadcast %cst_39 : f32 to vector<16x128xf32>
    %115 = arith.addf %4, %114 : vector<16x128xf32>
    %116 = math.log %113 : vector<16x128xf32>
    %117 = arith.mulf %115, %116 : vector<16x128xf32>
    %118 = arith.subf %117, %113 : vector<16x128xf32>
    %cst_40 = arith.constant 1.000000e+00 : f32
    %119 = vector.broadcast %cst_40 : f32 to vector<16x128xf32>
    %120 = arith.addf %4, %119 : vector<16x128xf32>
    %cst_41 = arith.constant 2.000000e+00 : f32
    %121 = vector.broadcast %cst_41 : f32 to vector<16x128xf32>
    %122 = arith.addf %4, %121 : vector<16x128xf32>
    %cst_42 = arith.constant 3.000000e+00 : f32
    %123 = vector.broadcast %cst_42 : f32 to vector<16x128xf32>
    %124 = arith.addf %4, %123 : vector<16x128xf32>
    %125 = arith.mulf %122, %124 : vector<16x128xf32>
    %126 = arith.mulf %120, %125 : vector<16x128xf32>
    %cst_43 = arith.constant 4.000000e+00 : f32
    %127 = vector.broadcast %cst_43 : f32 to vector<16x128xf32>
    %128 = arith.addf %4, %127 : vector<16x128xf32>
    %cst_44 = arith.constant 5.000000e+00 : f32
    %129 = vector.broadcast %cst_44 : f32 to vector<16x128xf32>
    %130 = arith.addf %4, %129 : vector<16x128xf32>
    %cst_45 = arith.constant 6.000000e+00 : f32
    %131 = vector.broadcast %cst_45 : f32 to vector<16x128xf32>
    %132 = arith.addf %4, %131 : vector<16x128xf32>
    %133 = arith.mulf %130, %132 : vector<16x128xf32>
    %134 = arith.mulf %128, %133 : vector<16x128xf32>
    %cst_46 = arith.constant 13.6888695 : f32
    %135 = vector.broadcast %cst_46 : f32 to vector<16x128xf32>
    %136 = arith.mulf %135, %4 : vector<16x128xf32>
    %cst_47 = arith.constant 106.921471 : f32
    %137 = vector.broadcast %cst_47 : f32 to vector<16x128xf32>
    %138 = arith.addf %136, %137 : vector<16x128xf32>
    %139 = arith.mulf %138, %4 : vector<16x128xf32>
    %cst_48 = arith.constant 245.592789 : f32
    %140 = vector.broadcast %cst_48 : f32 to vector<16x128xf32>
    %141 = arith.addf %139, %140 : vector<16x128xf32>
    %cst_49 = arith.constant -1.23053634 : f32
    %142 = vector.broadcast %cst_49 : f32 to vector<16x128xf32>
    %143 = arith.mulf %142, %4 : vector<16x128xf32>
    %cst_50 = arith.constant -13.537097 : f32
    %144 = vector.broadcast %cst_50 : f32 to vector<16x128xf32>
    %145 = arith.addf %143, %144 : vector<16x128xf32>
    %146 = arith.mulf %145, %4 : vector<16x128xf32>
    %cst_51 = arith.constant -36.9232864 : f32
    %147 = vector.broadcast %cst_51 : f32 to vector<16x128xf32>
    %148 = arith.addf %146, %147 : vector<16x128xf32>
    %cst_52 = arith.constant 1.000000e+00 : f32
    %149 = vector.broadcast %cst_52 : f32 to vector<16x128xf32>
    %150 = arith.mulf %149, %126 : vector<16x128xf32>
    %151 = arith.addf %150, %141 : vector<16x128xf32>
    %152 = arith.mulf %4, %126 : vector<16x128xf32>
    %153 = arith.divf %151, %152 : vector<16x128xf32>
    %154 = arith.mulf %4, %134 : vector<16x128xf32>
    %155 = arith.divf %148, %154 : vector<16x128xf32>
    %156 = arith.addf %153, %155 : vector<16x128xf32>
    %cst_53 = arith.constant 2.50662827 : f32
    %157 = vector.broadcast %cst_53 : f32 to vector<16x128xf32>
    %158 = arith.mulf %157, %156 : vector<16x128xf32>
    %159 = math.log %158 : vector<16x128xf32>
    %160 = arith.addf %118, %159 : vector<16x128xf32>
    %161 = arith.subf %111, %160 : vector<16x128xf32>
    %162 = arith.subf %6, %9 : vector<16x128xf32>
    %163 = arith.mulf %5, %162 : vector<16x128xf32>
    %164 = arith.addf %161, %163 : vector<16x128xf32>
    %165 = arith.subf %7, %9 : vector<16x128xf32>
    %166 = arith.mulf %4, %165 : vector<16x128xf32>
    %167 = arith.addf %164, %166 : vector<16x128xf32>
    %cst_54 = arith.constant -3.000000e+02 : f32
    %cst_55 = arith.constant 3.000000e+02 : f32
    %168 = vector.broadcast %cst_54 : f32 to vector<16x128xf32>
    %169 = arith.maximumf %168, %167 : vector<16x128xf32>
    %170 = vector.broadcast %cst_55 : f32 to vector<16x128xf32>
    %171 = arith.minimumf %170, %169 : vector<16x128xf32>
    %cst_56 = arith.constant 0.000000e+00 : f32
    %172 = vector.broadcast %cst_56 : f32 to vector<16x128xf32>
    %173 = arith.subf %172, %171 : vector<16x128xf32>
    %c16_i32 = arith.constant 16 : i32
    %174 = arith.muli %arg1, %c16_i32 : i32
    %175 = tpu.iota {dimensions = array<i32: 0>} : vector<16x128xi32>
    %176 = vector.broadcast %174 : i32 to vector<16x128xi32>
    %177 = arith.addi %176, %175 : vector<16x128xi32>
    %c40_i32 = arith.constant 40 : i32
    %178 = vector.broadcast %c40_i32 : i32 to vector<16x128xi32>
    %179 = arith.cmpi slt, %177, %178 : vector<16x128xi32>
    %cst_57 = arith.constant 0.000000e+00 : f32
    %180 = vector.broadcast %cst_57 : f32 to vector<16x128xf32>
    %181 = arith.select %179, %173, %180 : vector<16x128xi1>, vector<16x128xf32>
    %c0_58 = arith.constant 0 : index
    %c0_59 = arith.constant 0 : index
    %182 = vector.load %arg5[%c0_58, %c0_59] : memref<1x128xf32, #tpu.memory_space<vmem>>, vector<1x128xf32>
    %cst_60 = arith.constant dense<0.000000e+00> : vector<128xf32>
    %183 = vector.multi_reduction <add>, %181, %cst_60 [0] : vector<16x128xf32> to vector<128xf32>
    %184 = vector.shape_cast %183 : vector<128xf32> to vector<1x128xf32>
    %185 = arith.addf %182, %184 : vector<1x128xf32>
    %c0_61 = arith.constant 0 : index
    %c0_62 = arith.constant 0 : index
    %186 = vector.load %arg5[%c0_61, %c0_62] : memref<1x128xf32, #tpu.memory_space<vmem>>, vector<1x128xf32>
    tpu.vector_store %arg5[%c0_61, %c0_62], %185 {strides = array<i32>} : memref<1x128xf32, #tpu.memory_space<vmem>>, vector<1x128xf32>,
    return
  }
  func.func @transform_0(%arg0: i32, %arg1: i32) -> (i32, i32) {
    %c0_i32 = arith.constant 0 : i32
    return %arg1, %arg0 : i32, i32
  }
  func.func @transform_1(%arg0: i32, %arg1: i32) -> (i32, i32) {
    %c1_i32 = arith.constant 1 : i32
    %0 = arith.addi %c1_i32, %arg0 : i32
    %c0_i32 = arith.constant 0 : i32
    return %arg1, %0 : i32, i32
  }
  func.func @transform_2(%arg0: i32, %arg1: i32) -> (i32, i32) {
    %c0_i32 = arith.constant 0 : i32
    return %arg1, %arg0 : i32, i32
  }
  func.func @transform_3(%arg0: i32, %arg1: i32) -> (i32, i32) {
    %c0_i32 = arith.constant 0 : i32
    %c0_i32_0 = arith.constant 0 : i32
    return %c0_i32, %arg0 : i32, i32
  }
}

</mosaic_0001>

<bundles_post_ra>
// kernel: tpu_custom_call.1
= control target key start
LH: loop header
LB: loop body
LE: loop exit
PB: predicated region body
PF: predicated region fallthrough
CT: control target
= control target key end

     0   :  { %8 = vsyncpa [#allocation3], 0  ;;  %s2021_s0 = inlined_call_operand.hbm [shape: f32[40,256], index: 0, kind: input, shape index: {}]   ;;  %s2022_s1 = inlined_call_operand.hbm [shape: f32[40,256], index: 1, kind: input, shape index: {}]   ;;  %s2023_s2 = inlined_call_operand.hbm [shape: f32[40,128], index: 2, kind: input, shape index: {}]   ;;  %s2024_s3 = inlined_call_operand.hbm [shape: f32[1,128], index: 3, kind: output, shape index: {}]  }
   0x1   :  { %10 = vsyncpa [#allocation3 + $0x1], 0 }
   0x2   :  { %11 = vsyncpa [#allocation6], 0 }
   0x3   :  { %13 = vsyncpa [#allocation6 + $0x1], 0 }
   0x4   :  { %14 = vsyncpa [#allocation4], 0  ;;  %s1299_s12 = smov 0   ;;  %s1301_s13 = smov 0  }
   0x5   :  { %s1303_s14 = smov 0   ;;  %s1305_s15 = smov 0  }
   0x6   :  { %s1307_s16 = smov 0   ;;  %s1309_s17 = smov 0  }
   0x7 LB: > { %s1328_s18 = sadd.s32 4294967295, %s1264_s17   ;;  %s29_s19 = sadd.s32 1, %s1260_s16  ;;  %s1264_s17 = sphi %s1309_s17, %s20_s17   ;;  %s1260_s16 = sphi %s1307_s16, %s2074_s16   ;;  %s1256_s15 = sphi %s1305_s15, %s2073_s15   ;;  %s1252_s14 = sphi %s1303_s14, %s2072_s14   ;;  %s1248_s13 = sphi %s1301_s13, %s2071_s13   ;;  %s1244_s12 = sphi %s1299_s12, %s2070_s12  }
   0x8   : > { %p30_p0 = scmp.ge.s32.totalorder %s29_s19, 3  ;;  %s41_s20 = sadd.s32 1, %s1252_s14 }
   0x9   : > { %p48_p1 = scmp.ne.s32.totalorder %s1252_s14, %s1248_s13  ;;  %p49_p2 = scmp.eq.s32.totalorder %s1264_s17, 0 }
   0xa   : > { %s2076_s19 = smov (%p30_p0, %s29_s19), 0  ;;  %p54_p4 = scmp.ne.s32.totalorder %s1248_s13, %s1244_s12 }
   0xb   : > { %p1337_p3 = por %p49_p2, %p48_p1  ;;  %s36_s22 = ssub.s32 %s1260_s16, %s2076_s19 }
   0xc   : > { %p55_p5 = scmp.eq.s32.totalorder %s1328_s18, 0  ;;  %p39_p6 = scmp.eq.s32.totalorder %s36_s22, 0 }
   0xd   : > { %p894_p8 = scmp.ge.s32.totalorder %s1264_s17, 3 }
   0xe   : > { %p1345_p7 = por %p55_p5, %p54_p4 }
   0xf   : > { %s1350_s24 = scalar_select %p39_p6, %s1252_s14, %s41_s20  }
  0x10   : > { %158 = sbr.rel (%p894_p8) target bundleno = 132 (0x84), region = 16 }
  0x15   : > { %161 = sbr.rel (!%p1337_p3) target bundleno = 58 (0x3a), region = 20  ;;  %s162_s25 = sand.u32 (%p1337_p3), 1, %s1252_s14  }
  0x16   : > { %s896_s26 = sshll.u32 (%p1337_p3), %s1260_s16, 1  ;;  %s895_s27 = sshll.u32 (%p1337_p3), %s162_s25, 4 }
  0x17   : > { %s168_s28 = ssub.s32 (%p1337_p3), 5, %s896_s26  ;;  %s1360_s5 = scalar_lea.sflag (%p1337_p3), [#allocation3], %s162_s25 }
  0x18   : > { %p169_p9 = scmp.lt.s32.totalorder (%p1337_p3), %s168_s28, 2  ;;  %s166_s6 = scalar_lea.vmem (%p1337_p3), [#allocation2], %s895_s27 }
  0x1a   : > { %s2078_s28 = smov (!%p169_p9, %s168_s28), 2 }
  0x1b   : > { %s897_s29 = sshll.u32 %s2078_s28, 3 }
  0x1c   : > { %s172_s30 = ssub.s32 16, %s897_s29 }
  0x1d   : > { %s173_s4 = sshll.u32 %s172_s30, 4 }
  0x1e   : > { %174 = vsyncadd %s1360_s5, %s173_s4  ;;  %p1363_p10 = scmp.ne.s32.totalorder %s897_s29, 0  ;;  %s931_s8 = sshll.u32 %s1260_s16, 5 }
  0x1f   : > { %s179_s11 = scalar_lea.hbm %s2021_s0, %s931_s8  ;;  %s1371_s12 = sshll.u32 %s166_s6, 4  ;;  %s184_s12 = int_to_ptr.vmem [resolvable:$true] %s1371_s12 }
  0x20   : > { %s181_s20 = sshll.u32 %s179_s11, 4  ;;  %s902_s22 = sshll.u32 %s2078_s28, 7  ;;  %s1374_s20 = int_to_ptr.hbm [resolvable:$true] %s181_s20 }
  0x21   : > { %s1061_s25 = sshra.s32 %s1374_s20, 4  ;;  %s1063_s26 = sshrl.u32 %s902_s22, 4  ;;  %s1062_s25 = int_to_ptr.hbm [resolvable:$true] %s1061_s25 }
  0x22   : > { %s1068_s27 = scalar_lea.hbm %s1062_s25, %s1063_s26  ;;  %s1072_s4 = scalar_lea.hbm %s2021_s0, 80 }
  0x23   : > { %p1069_p11 = scmp.ne.s32.totalorder %s1062_s25, %s1068_s27  ;;  %p1074_p0 = scmp.lt.s32.totalorder %s1072_s4, %s1068_s27 }
  0x25   : > { %p1070_p12 = pnand %p1069_p11, %p1363_p10 }
  0x27   : > { %p1071_p13 = pneg %p1070_p12 }
  0x29   : > { %p1076_p1 = pnand %p1074_p0, %p1071_p13 }
  0x2b   : > { %1079 = shalt.err (!%p1076_p1)
}
  0x2c   : > { %s1080_s6 = sshra.s32 %s184_s12, 4  ;;  %s1266_s9 = smov [#allocation2]   ;;  %s1081_s6 = int_to_ptr.vmem [resolvable:$true] %s1080_s6 }
  0x2d   : > { %s1087_s8 = scalar_lea.vmem %s1081_s6, %s1063_s26  ;;  %s1091_s10 = scalar_lea.vmem %s1266_s9, 32 }
  0x2e   : > { %p1088_p2 = scmp.ne.s32.totalorder %s1081_s6, %s1087_s8  ;;  %p1093_p6 = scmp.lt.s32.totalorder %s1091_s10, %s1087_s8 }
  0x30   : > { %p1089_p4 = pnand %p1088_p2, %p1363_p10 }
  0x32   : > { %p1090_p5 = pneg %p1089_p4 }
  0x34   : > { %p1095_p8 = pnand %p1093_p6, %p1090_p5 }
  0x36   : > { %1098 = shalt.err (!%p1095_p8)
}
  0x37   : > { %s1267_s11 = smov 256   ;;  %s1268_s25 = smov 128  }
  0x38   : > { %s1269_s27 = smov 8  }
  0x39   : > { %189 = dma.hbm_to_vmem [thread:$0]  (%p1363_p10), %s1374_s20, %s902_s22, %s184_s12, %s1360_s5, %s1267_s11, %s1268_s25, %s1269_s27  }
  0x3a PF: > { %192 = sbr.rel (!%p1337_p3) target bundleno = 96 (0x60), region = 24  ;;  %s193_s26 = sand.u32 (%p1337_p3), 1, %s1264_s17  }
  0x3b   : > { %s195_s29 = sand.u32 (%p1337_p3), 1, %s1252_s14   ;;  %s904_s4 = sshll.u32 (%p1337_p3), %s1260_s16, 1 }
  0x3c   : > { %s903_s30 = sshll.u32 (%p1337_p3), %s195_s29, 4  ;;  %s200_s6 = ssub.s32 (%p1337_p3), 5, %s904_s4 }
  0x3d   : > { %p201_p9 = scmp.lt.s32.totalorder (%p1337_p3), %s200_s6, 2  ;;  %s1405_s5 = scalar_lea.sflag (%p1337_p3), [#allocation6], %s193_s26 }
  0x3e   : > { %s197_s12 = scalar_lea.vmem (%p1337_p3), [#allocation5], %s903_s30 }
  0x3f   : > { %s2080_s6 = smov (!%p201_p9, %s200_s6), 2 }
  0x40   : > { %s905_s7 = sshll.u32 %s2080_s6, 3 }
  0x41   : > { %s204_s8 = ssub.s32 16, %s905_s7 }
  0x42   : > { %s205_s28 = sshll.u32 %s204_s8, 4 }
  0x43   : > { %206 = vsyncadd %s1405_s5, %s205_s28  ;;  %p1408_p10 = scmp.ne.s32.totalorder %s905_s7, 0  ;;  %s932_s22 = sshll.u32 %s1260_s16, 5 }
  0x44   : > { %s817_s11 = scalar_lea.hbm %s2022_s1, %s932_s22  ;;  %s1416_s25 = sshll.u32 %s197_s12, 4  ;;  %s216_s25 = int_to_ptr.vmem [resolvable:$true] %s1416_s25 }
  0x45   : > { %s818_s27 = scalar_lea.hbm %s817_s11, 8  ;;  %s910_s29 = sshll.u32 %s2080_s6, 7 }
  0x46   : > { %s1419_s26 = sshll.u32 %s818_s27, 4  ;;  %s1102_s4 = sshrl.u32 %s910_s29, 4  ;;  %s214_s26 = int_to_ptr.hbm [resolvable:$true] %s1419_s26 }
  0x47   : > { %s1100_s30 = sshra.s32 %s214_s26, 4  ;;  %s1111_s12 = scalar_lea.hbm %s2022_s1, 80  ;;  %s1101_s30 = int_to_ptr.hbm [resolvable:$true] %s1100_s30 }
  0x48   : > { %s1107_s7 = scalar_lea.hbm %s1101_s30, %s1102_s4 }
  0x49   : > { %p1108_p11 = scmp.ne.s32.totalorder %s1101_s30, %s1107_s7  ;;  %p1113_p0 = scmp.lt.s32.totalorder %s1111_s12, %s1107_s7 }
  0x4b   : > { %p1109_p12 = pnand %p1108_p11, %p1408_p10 }
  0x4d   : > { %p1110_p13 = pneg %p1109_p12 }
  0x4f   : > { %p1115_p1 = pnand %p1113_p0, %p1110_p13 }
  0x51   : > { %1118 = shalt.err (!%p1115_p1)
}
  0x52   : > { %s1119_s22 = sshra.s32 %s216_s25, 4  ;;  %s1270_s10 = smov [#allocation5]   ;;  %s1120_s22 = int_to_ptr.vmem [resolvable:$true] %s1119_s22 }
  0x53   : > { %s1126_s9 = scalar_lea.vmem %s1120_s22, %s1102_s4  ;;  %s1130_s11 = scalar_lea.vmem %s1270_s10, 32 }
  0x54   : > { %p1127_p2 = scmp.ne.s32.totalorder %s1120_s22, %s1126_s9  ;;  %p1132_p6 = scmp.lt.s32.totalorder %s1130_s11, %s1126_s9 }
  0x56   : > { %p1128_p4 = pnand %p1127_p2, %p1408_p10 }
  0x58   : > { %p1129_p5 = pneg %p1128_p4 }
  0x5a   : > { %p1134_p8 = pnand %p1132_p6, %p1129_p5 }
  0x5c   : > { %1137 = shalt.err (!%p1134_p8)
}
  0x5d   : > { %s1271_s27 = smov 256   ;;  %s1272_s30 = smov 128  }
  0x5e   : > { %s1273_s7 = smov 8  }
  0x5f   : > { %221 = dma.hbm_to_vmem [thread:$0]  (%p1408_p10), %s214_s26, %s910_s29, %s216_s25, %s1405_s5, %s1271_s27, %s1272_s30, %s1273_s7  }
  0x60 PF: > { %224 = sbr.rel (!%p1337_p3) target bundleno = 132 (0x84), region = 28  ;;  %s225_s4 = sand.u32 (%p1337_p3), 1, %s1264_s17  }
  0x61   : > { %s227_s8 = sand.u32 (%p1337_p3), 1, %s1252_s14   ;;  %s912_s12 = sshll.u32 (%p1337_p3), %s1260_s16, 1 }
  0x62   : > { %s911_s28 = sshll.u32 (%p1337_p3), %s227_s8, 4  ;;  %s231_s22 = ssub.s32 (%p1337_p3), 5, %s912_s12 }
  0x63   : > { %p232_p9 = scmp.lt.s32.totalorder (%p1337_p3), %s231_s22, 2  ;;  %s1453_s5 = scalar_lea.sflag (%p1337_p3), [#allocation6], %s225_s4 }
  0x64   : > { %s229_s21 = scalar_lea.vmem (%p1337_p3), [#allocation7], %s911_s28 }
  0x65   : > { %s2082_s22 = smov (!%p232_p9, %s231_s22), 2 }
  0x66   : > { %s913_s20 = sshll.u32 %s2082_s22, 3 }
  0x67   : > { %s235_s6 = ssub.s32 16, %s913_s20 }
  0x68   : > { %s236_s9 = sshll.u32 %s235_s6, 4 }
  0x69   : > { %237 = vsyncadd %s1453_s5, %s236_s9  ;;  %p1456_p3 = scmp.ne.s32.totalorder %s913_s20, 0  ;;  %s933_s26 = sshll.u32 %s1260_s16, 4 }
  0x6a   : > { %s241_s11 = scalar_lea.hbm %s2023_s2, %s933_s26  ;;  %s1464_s27 = sshll.u32 %s229_s21, 4  ;;  %s246_s27 = int_to_ptr.vmem [resolvable:$true] %s1464_s27 }
  0x6b   : > { %s243_s30 = sshll.u32 %s241_s11, 4  ;;  %s917_s7 = sshll.u32 %s2082_s22, 7  ;;  %s1467_s30 = int_to_ptr.hbm [resolvable:$true] %s243_s30 }
  0x6c   : > { %s1139_s4 = sshra.s32 %s1467_s30, 4  ;;  %s1141_s8 = sshrl.u32 %s917_s7, 4  ;;  %s1140_s4 = int_to_ptr.hbm [resolvable:$true] %s1139_s4 }
  0x6d   : > { %s1146_s28 = scalar_lea.hbm %s1140_s4, %s1141_s8  ;;  %s1150_s6 = scalar_lea.hbm %s2023_s2, 40 }
  0x6e   : > { %p1147_p10 = scmp.ne.s32.totalorder %s1140_s4, %s1146_s28  ;;  %p1152_p13 = scmp.lt.s32.totalorder %s1150_s6, %s1146_s28 }
  0x70   : > { %p1148_p11 = pnand %p1147_p10, %p1456_p3 }
  0x72   : > { %p1149_p12 = pneg %p1148_p11 }
  0x74   : > { %p1154_p0 = pnand %p1152_p13, %p1149_p12 }
  0x76   : > { %1157 = shalt.err (!%p1154_p0)
}
  0x77   : > { %s1158_s9 = sshra.s32 %s246_s27, 4  ;;  %s1274_s26 = smov [#allocation7]   ;;  %s1159_s9 = int_to_ptr.vmem [resolvable:$true] %s1158_s9 }
  0x78   : > { %s1165_s21 = scalar_lea.vmem %s1159_s9, %s1141_s8  ;;  %s1169_s29 = scalar_lea.vmem %s1274_s26, 32 }
  0x79   : > { %p1166_p1 = scmp.ne.s32.totalorder %s1159_s9, %s1165_s21  ;;  %p1171_p5 = scmp.lt.s32.totalorder %s1169_s29, %s1165_s21 }
  0x7b   : > { %p1167_p2 = pnand %p1166_p1, %p1456_p3 }
  0x7d   : > { %p1168_p4 = pneg %p1167_p2 }
  0x7f   : > { %p1173_p6 = pnand %p1171_p5, %p1168_p4 }
  0x81   : > { %1176 = shalt.err (!%p1173_p6)
}
  0x82   : > { %s1275_s10 = smov 128   ;;  %s1276_s11 = smov 8  }
  0x83   : > { %251 = dma.hbm_to_vmem [thread:$0]  (%p1456_p3), %s1467_s30, %s917_s7, %s246_s27, %s1453_s5, %s1275_s10, %s1275_s10, %s1276_s11  }
  0x84 PF: > { %p918_p8 = scmp.ge.s32.totalorder %s1264_s17, 1  ;;  %p253_p9 = scmp.lt.s32.totalorder %s1264_s17, 4 }
  0x86   : > { %p254_p10 = pnand %p918_p8, %p253_p9 }
  0x87   : > { %s259_s4 = sand.u32 (!%p254_p10), 1, %s1248_s13  }
  0x88   : > { %257 = sbr.rel (%p254_p10) target bundleno = 289 (0x121), region = 32  ;;  %s1493_s8 = sshll.u32 (!%p254_p10), %s259_s4, 4 }
  0x89   : > { %s260_s28 = scalar_lea.sflag (!%p254_p10), [#allocation3], %s259_s4  ;;  %s263_s12 = scalar_lea.vmem (!%p254_p10), [#allocation2], %s1493_s8 }
  0x8d   : > { %1231 = dma.done.wait (%p1345_p7), %s260_s28, 256  }
  0x8e   : > { %1233 = vsyncadd (%p1345_p7), %s260_s28, 4294967040  ;;  %s269_s22 = sand.u32 1, %s1328_s18   ;;  %s273_s25 = scalar_lea.vmem [#allocation5], %s1493_s8 }
  0x8f   : > { %s270_s5 = scalar_lea.sflag [#allocation6], %s269_s22 }
  0x90   : > { %1235 = dma.done.wait (%p1345_p7), %s270_s5, 512  }
  0x91   : > { %1237 = vsyncadd (%p1345_p7), %s270_s5, 4294966784  ;;  %s283_s27 = scalar_lea.vmem [#allocation7], %s1493_s8  ;;  %p922_p3 = scmp.ne.s32.totalorder %s1256_s15, 0 }
  0x93   : > { %331 = sbr.rel (%p922_p3) target bundleno = 154 (0x9a), region = 48 }
  0x98   : > { %v1277_v0 = vmov 0.0  }
  0x99   : > { %332 = vst [vmem:[#allocation8] sm:$0x1] %v1277_v0 }
  0x9a PF: > { %v1508_v1 = vld [vmem:[%s273_s25] sm:$0xff]  ;;  %v1510_v2 = vld [vmem:[%s273_s25 + $0x8] sm:$0xff]  ;;  %s925_s23 = sshll.u32 %s1256_s15, 4  ;;  %s1278_s15 = smov [#allocation8]  }
  0x9b   : > { %v1512_v3 = vld [vmem:[%s283_s27] sm:$0xff]  ;;  %v1514_v4 = vld [vmem:[%s283_s27 + $0x8] sm:$0xff]  ;;  %s779_s30 = sshll.u32 %s1278_s15, 4  ;;  %s781_s6 = sshll.u32 %s2024_s3, 4  ;;  %s780_s30 = int_to_ptr.vmem [resolvable:$true] %s779_s30  ;;  %s782_s6 = int_to_ptr.hbm [resolvable:$true] %s781_s6 }
  0x9c   : > { %v1518_v5 = vadd.f32 %v1512_v3, %v1508_v1  ;;  %v1522_v6 = vadd.f32 %v1514_v4, %v1510_v2  ;;  %v333_v35 = vld [vmem:[%s263_s12] sm:$0xff]  ;;  %v334_v38 = vld [vmem:[%s263_s12 + $0x8] sm:$0xff]  ;;  %v1576_v50 = vadd.f32 1.0, %v1512_v3  ;;  %v1584_v54 = vadd.f32 1.0, %v1514_v4  ;;  %p941_p7 = scmp.eq.s32.totalorder %s1328_s18, 2 }
  0x9d   : > { %v347_v41 = vadd.f32 %v1508_v1, %v333_v35  ;;  %v1567_v45 = vadd.f32 %v1510_v2, %v334_v38 }
  0x9e   : > { %v369_v7 = vadd.f32 2.0, %v1518_v5  ;;  %v370_v8 = vadd.f32 2.0, %v1522_v6  ;;  %v371_v9 = vadd.f32 3.0, %v1518_v5  ;;  %v367_v10 = vadd.f32 1.0, %v1518_v5 }
  0x9f   : > { %v372_v11 = vadd.f32 3.0, %v1522_v6  ;;  %v368_v12 = vadd.f32 1.0, %v1522_v6  ;;  %v379_v15 = vadd.f32 5.0, %v1518_v5  ;;  %v380_v16 = vadd.f32 5.0, %v1522_v6 }
  0xa0   : > { %v373_v13 = vmul.f32 %v371_v9, %v369_v7  ;;  %v381_v17 = vadd.f32 6.0, %v1518_v5  ;;  %v382_v18 = vadd.f32 6.0, %v1522_v6  ;;  %v387_v20 = vmul.f32 13.688869, %v1518_v5 }
  0xa1   : > { %v374_v14 = vmul.f32 %v372_v11, %v370_v8  ;;  %v377_v22 = vadd.f32 4.0, %v1518_v5  ;;  %v378_v23 = vadd.f32 4.0, %v1522_v6  ;;  %v388_v26 = vmul.f32 13.688869, %v1522_v6 }
  0xa2   : > { %v375_v19 = vmul.f32 %v373_v13, %v367_v10  ;;  %v383_v24 = vmul.f32 %v381_v17, %v379_v15  ;;  %v384_v25 = vmul.f32 %v382_v18, %v380_v16  ;;  %v389_v27 = vadd.f32 106.92147, %v387_v20 }
  0xa3   : > { %v1535_v21 = vmul.f32 %v374_v14, %v368_v12  ;;  %v395_v28 = vmul.f32 -1.2305363, %v1518_v5  ;;  %v390_v33 = vadd.f32 106.92147, %v388_v26  ;;  %v396_v34 = vmul.f32 -1.2305363, %v1522_v6 }
  0xa4   : > { %v1542_v29 = vmul.f32 %v375_v19, %v1518_v5  ;;  %v385_v31 = vmul.f32 %v383_v24, %v377_v22  ;;  %v386_v32 = vmul.f32 %v384_v25, %v378_v23  ;;  %v391_v36 = vmul.f32 %v389_v27, %v1518_v5 }
  0xa5   : > { %v1546_v30 = vmul.f32 %v1535_v21, %v1522_v6  ;;  %v397_v37 = vadd.f32 -13.537097, %v395_v28  ;;  %v392_v42 = vmul.f32 %v390_v33, %v1522_v6  ;;  %v398_v43 = vadd.f32 -13.537097, %v396_v34 }
  0xa6   : > { %1001 = vrcp.f32 %v1542_v29  ;;  %v1557_v39 = vmul.f32 %v385_v31, %v1518_v5  ;;  %v1560_v40 = vmul.f32 %v386_v32, %v1522_v6  ;;  %v393_v46 = vadd.f32 245.59279, %v391_v36 }
  0xa7   : > { %1003 = vrcp.f32 %v1546_v30  ;;  %v399_v47 = vmul.f32 %v397_v37, %v1518_v5  ;;  %v416_v49 = vand.u32 2147483647, %v1542_v29  ;;  %v1579_v51 = vadd.f32 5.5, %v1518_v5 }
  0xa8   : > { %1005 = vlog2.f32 %v333_v35  ;;  %v418_v52 = vand.u32 2147483648, %v1542_v29  ;;  %v433_v53 = vand.u32 2147483648, %v1546_v30  ;;  %v1588_v56 = vadd.f32 245.59279, %v392_v42 }
  0xa9   : > { %1007 = vlog2.f32 %v334_v38  ;;  %v1591_v57 = vmul.f32 %v398_v43, %v1522_v6  ;;  %v1595_v60 = vadd.f32 -36.923286, %v399_v47  ;;  %v1597_v61 = vadd.f32 %v393_v46, %v375_v19 }
  0xaa   : > { %1009 = vrcp.f32 %v1557_v39  ;;  %v431_v63 = vand.u32 2147483647, %v1546_v30  ;;  %vm412_vm0 = vweird.f32 %v1542_v29  ;;  %vm1606_vm1 = vcmp.eq.f32.partialorder %v416_v49, 8.507059e+37 }
  0xab   : > { %1011 = vrcp.f32 %v1560_v40  ;;  %vm427_vm2 = vweird.f32 %v1546_v30  ;;  %v419_v10 = vor.u32 1.1754944e-38, %v418_v52  ;;  %v434_v12 = vor.u32 1.1754944e-38, %v433_v53 }
  0xac   : > { %v1564_v44 = vpop.eup %1001  ;;  %1013 = vlog2.f32 %v347_v41  ;;  %vm444_vm3 = vweird.f32 %v1557_v39  ;;  %v448_v15 = vand.u32 2147483647, %v1557_v39  ;;  %v450_v16 = vand.u32 2147483648, %v1557_v39 }
  0xad   : > { %v408_v48 = vmul.f32 %v1564_v44, %v1542_v29  ;;  %v1586_v55 = vpop.eup %1003  ;;  %vm413_vm4 = vweird.f32 %v1564_v44  ;;  %vm1617_vm5 = vcmp.eq.f32.partialorder %v431_v63, 8.507059e+37  ;;  %v463_v20 = vand.u32 2147483647, %v1560_v40 }
  0xae   : > { %v1593_v59 = vpop.eup %1005  ;;  %v423_v62 = vmul.f32 %v1586_v55, %v1546_v30  ;;  %v495_v22 = vadd.f32 2.0, %v1576_v50  ;;  %v497_v26 = vadd.f32 3.0, %v1576_v50  ;;  %vm1630_vm7 = vmor %vm412_vm0, %vm413_vm4  ;;  %vm428_vm8 = vweird.f32 %v1586_v55 }
  0xaf   : > { %v409_v58 = vsub.f32 1.0, %v408_v48  ;;  %v1602_v0 = vpop.eup %1007  ;;  %v496_v31 = vadd.f32 2.0, %v1584_v54  ;;  %v498_v32 = vadd.f32 3.0, %v1584_v54  ;;  %vm459_vm9 = vweird.f32 %v1560_v40  ;;  %vm1655_vm13 = vmor %vm427_vm2, %vm428_vm8 }
  0xb0   : > { %v1010_v9 = vpop.eup %1009  ;;  %v424_v11 = vsub.f32 1.0, %v423_v62  ;;  %v465_v34 = vand.u32 2147483648, %v1560_v40  ;;  %vm1646_vm12 = vcmp.eq.f32.partialorder %v448_v15, 8.507059e+37  ;;  %v451_v37 = vor.u32 1.1754944e-38, %v450_v16 }
  0xb1   : > { %v410_v7 = vmul.f32 %v1564_v44, %v409_v58  ;;  %v1012_v13 = vpop.eup %1011  ;;  %v440_v14 = vmul.f32 %v1010_v9, %v1557_v39  ;;  %vm445_vm6 = vweird.f32 %v1010_v9  ;;  %v493_v42 = vadd.f32 1.0, %v1576_v50 }
  0xb2   : > { %v425_v17 = vmul.f32 %v1586_v55, %v424_v11  ;;  %v455_v19 = vmul.f32 %v1012_v13, %v1560_v40  ;;  %v1624_v23 = vpop.eup %1013  ;;  %vm460_vm10 = vweird.f32 %v1012_v13  ;;  %vm1642_vm11 = vmor %vm444_vm3, %vm445_vm6  ;;  %v499_v43 = vmul.f32 %v497_v26, %v495_v22 }
  0xb3   : > { %v411_v24 = vadd.f32 %v1564_v44, %v410_v7  ;;  %v441_v25 = vsub.f32 1.0, %v440_v14  ;;  %vm1660_vm14 = vmor %vm459_vm9, %vm460_vm10  ;;  %vm1664_vm15 = vcmp.eq.f32.partialorder %v463_v20, 8.507059e+37  ;;  %v500_v30 = vmul.f32 %v498_v32, %v496_v31 }
  0xb4   : > { %v456_v28 = vsub.f32 1.0, %v455_v19  ;;  %v426_v35 = vadd.f32 %v1586_v55, %v425_v17  ;;  %v466_v52 = vor.u32 1.1754944e-38, %v465_v34  ;;  %v505_v53 = vadd.f32 5.0, %v1576_v50 }
  0xb5   : > { %v442_v33 = vmul.f32 %v1010_v9, %v441_v25  ;;  %v415_v41 = vsel %vm1630_vm7, %v1564_v44, %v411_v24  ;;  %v494_v44 = vadd.f32 1.0, %v1584_v54  ;;  %v507_v58 = vadd.f32 6.0, %v1576_v50 }
  0xb6   : > { %v457_v38 = vmul.f32 %v1012_v13, %v456_v28  ;;  %v420_v62 = vsel %vm1606_vm1, %v419_v10, %v415_v41  ;;  %v430_v63 = vsel %vm1655_vm13, %v1586_v55, %v426_v35  ;;  %v506_v7 = vadd.f32 5.0, %v1584_v54 }
  0xb7   : > { %v443_v39 = vadd.f32 %v1010_v9, %v442_v33  ;;  %v508_v11 = vadd.f32 6.0, %v1584_v54  ;;  %v501_v15 = vmul.f32 %v499_v43, %v493_v42  ;;  %v513_v16 = vmul.f32 13.688869, %v1576_v50 }
  0xb8   : > { %v458_v46 = vadd.f32 %v1012_v13, %v457_v38  ;;  %v402_v8 = vadd.f32 -36.923286, %v1591_v57  ;;  %v404_v10 = vadd.f32 %v1588_v56, %v1535_v21  ;;  %v1688_v17 = vmul.f32 %v500_v30, %v494_v44 }
  0xb9   : > { %v447_v49 = vsel %vm1642_vm11, %v1010_v9, %v443_v39  ;;  %v503_v55 = vadd.f32 4.0, %v1576_v50  ;;  %v421_v19 = vmul.f32 %v420_v62, %v1597_v61  ;;  %v435_v20 = vsel %vm1617_vm5, %v434_v12, %v430_v63 }
  0xba   : > { %v452_v14 = vsel %vm1646_vm12, %v451_v37, %v447_v49  ;;  %v462_v9 = vsel %vm1660_vm14, %v1012_v13, %v458_v46  ;;  %v504_v22 = vadd.f32 4.0, %v1584_v54  ;;  %v509_v13 = vmul.f32 %v507_v58, %v505_v53 }
  0xbb   : > { %v453_v24 = vmul.f32 %v452_v14, %v1595_v60  ;;  %v467_v57 = vsel %vm1664_vm15, %v466_v52, %v462_v9  ;;  %v510_v25 = vmul.f32 %v508_v11, %v506_v7  ;;  %v514_v21 = vmul.f32 13.688869, %v1584_v54 }
  0xbc   : > { %v515_v56 = vadd.f32 106.92147, %v513_v16  ;;  %v521_v26 = vmul.f32 -1.2305363, %v1576_v50  ;;  %v522_v27 = vmul.f32 -1.2305363, %v1584_v54  ;;  %v1702_v61 = vmul.f32 %v501_v15, %v1576_v50 }
  0xbd   : > { %1015 = vlog2.f32 %v1567_v45  ;;  %v1706_v12 = vadd.f32 5.5, %v1522_v6  ;;  %v1710_v60 = vmul.f32 %v1688_v17, %v1584_v54  ;;  %v436_v18 = vmul.f32 %v435_v20, %v404_v10 }
  0xbe   : > { %1017 = vlog2.f32 %v1579_v51  ;;  %v468_v28 = vmul.f32 %v467_v57, %v402_v8  ;;  %v511_v31 = vmul.f32 %v509_v13, %v503_v55  ;;  %v469_v32 = vadd.f32 %v453_v24, %v421_v19 }
  0xbf   : > { %v1714_v33 = vadd.f32 5.5, %v1576_v50  ;;  %v512_v34 = vmul.f32 %v510_v25, %v504_v22  ;;  %v516_v35 = vadd.f32 106.92147, %v514_v21  ;;  %v517_v45 = vmul.f32 %v515_v56, %v1576_v50 }
  0xc0   : > { %v523_v29 = vadd.f32 -13.537097, %v521_v26  ;;  %v524_v36 = vadd.f32 -13.537097, %v522_v27  ;;  %1019 = vrcp.f32 %v1702_v61  ;;  %v470_v37 = vadd.f32 %v468_v28, %v436_v18 }
  0xc1   : > { %1021 = vrcp.f32 %v1710_v60  ;;  %v1721_v38 = vadd.f32 5.5, %v1584_v54  ;;  %v1724_v41 = vmul.f32 %v511_v31, %v1576_v50  ;;  %v471_v39 = vmul.f32 2.5066283, %v469_v32 }
  0xc2   : > { %1023 = vlog2.f32 %v1706_v12  ;;  %v518_v42 = vmul.f32 %v516_v35, %v1584_v54  ;;  %v1731_v43 = vmul.f32 %v512_v34, %v1584_v54  ;;  %v519_v47 = vadd.f32 245.59279, %v517_v45 }
  0xc3   : > { %v1726_v40 = vpop.eup %1015  ;;  %1025 = vlog2.f32 %v1714_v33  ;;  %v525_v48 = vmul.f32 %v523_v29, %v1576_v50  ;;  %v526_v44 = vmul.f32 %v524_v36, %v1584_v54  ;;  %v542_v30 = vand.u32 2147483647, %v1702_v61 }
  0xc4   : > { %v1733_v46 = vpop.eup %1017  ;;  %1027 = vrcp.f32 %v1724_v41  ;;  %v544_v49 = vand.u32 2147483648, %v1702_v61  ;;  %v1743_v53 = vmul.f32 2.5066283, %v470_v37  ;;  %v1748_v62 = vadd.f32 245.59279, %v518_v42 }
  0xc5   : > { %1029 = vrcp.f32 %v1731_v43  ;;  %vm538_vm0 = vweird.f32 %v1702_v61  ;;  %v1755_v11 = vadd.f32 -36.923286, %v525_v48  ;;  %v1757_v14 = vadd.f32 -36.923286, %v526_v44 }
  0xc6   : > { %v1741_v52 = vpop.eup %1019  ;;  %1031 = vlog2.f32 %v1721_v38  ;;  %v1759_v9 = vadd.f32 %v519_v47, %v501_v15  ;;  %vm1765_vm1 = vcmp.eq.f32.partialorder %v542_v30, 8.507059e+37  ;;  %v545_v19 = vor.u32 1.1754944e-38, %v544_v49 }
  0xc7   : > { %v1746_v58 = vpop.eup %1021  ;;  %1033 = vlog2.f32 %v471_v39  ;;  %v534_v63 = vmul.f32 %v1741_v52, %v1702_v61  ;;  %vm553_vm2 = vweird.f32 %v1710_v60  ;;  %vm539_vm3 = vweird.f32 %v1741_v52 }
  0xc8   : > { %v1753_v7 = vpop.eup %1023  ;;  %v549_v16 = vmul.f32 %v1746_v58, %v1710_v60  ;;  %v557_v15 = vand.u32 2147483647, %v1710_v60  ;;  %v576_v13 = vand.u32 2147483648, %v1724_v41  ;;  %v559_v25 = vand.u32 2147483648, %v1710_v60  ;;  %vm1790_vm6 = vmor %vm538_vm0, %vm539_vm3 }
  0xc9   : > { %v1763_v8 = vpop.eup %1025  ;;  %v535_v10 = vsub.f32 1.0, %v534_v63  ;;  %vm570_vm4 = vweird.f32 %v1724_v41  ;;  %v574_v27 = vand.u32 2147483647, %v1724_v41  ;;  %vm585_vm5 = vweird.f32 %v1731_v43 }
  0xca   : > { %v1028_v20 = vpop.eup %1027  ;;  %v550_v22 = vsub.f32 1.0, %v549_v16  ;;  %v591_v35 = vand.u32 2147483648, %v1731_v43  ;;  %vm554_vm8 = vweird.f32 %v1746_v58  ;;  %v577_v45 = vor.u32 1.1754944e-38, %v576_v13 }
  0xcb   : > { %v1030_v24 = vpop.eup %1029  ;;  %v536_v57 = vmul.f32 %v1741_v52, %v535_v10  ;;  %v566_v21 = vmul.f32 %v1028_v20, %v1724_v41  ;;  %vm571_vm7 = vweird.f32 %v1028_v20  ;;  %v621_v37 = vadd.f32 2.0, %v1508_v1  ;;  %vm1812_vm11 = vmor %vm553_vm2, %vm554_vm8 }
  0xcc   : > { %v1777_v56 = vpop.eup %1031  ;;  %v551_v26 = vmul.f32 %v1746_v58, %v550_v22  ;;  %v581_v18 = vmul.f32 %v1030_v24, %v1731_v43  ;;  %vm586_vm9 = vweird.f32 %v1030_v24  ;;  %v622_v39 = vadd.f32 2.0, %v1510_v2  ;;  %vm1805_vm10 = vmor %vm570_vm4, %vm571_vm7 }
  0xcd   : > { %v1783_v28 = vpop.eup %1033  ;;  %v537_v31 = vadd.f32 %v1741_v52, %v536_v57  ;;  %v567_v34 = vsub.f32 1.0, %v566_v21  ;;  %v623_v61 = vadd.f32 3.0, %v1508_v1  ;;  %v624_v30 = vadd.f32 3.0, %v1510_v2  ;;  %vm1824_vm14 = vmor %vm585_vm5, %vm586_vm9 }
  0xce   : > { %v582_v29 = vsub.f32 1.0, %v581_v18  ;;  %v552_v47 = vadd.f32 %v1746_v58, %v551_v26  ;;  %vm1816_vm12 = vcmp.eq.f32.partialorder %v557_v15, 8.507059e+37  ;;  %vm575_vm13 = vcmp.eq.f32.partialorder %v574_v27, 8.507059e+37 }
  0xcf   : > { %v568_v36 = vmul.f32 %v1028_v20, %v567_v34  ;;  %v541_v42 = vsel %vm1790_vm6, %v1741_v52, %v537_v31  ;;  %v589_v41 = vand.u32 2147483647, %v1731_v43  ;;  %v560_v16 = vor.u32 1.1754944e-38, %v559_v25 }
  0xd0   : > { %v583_v44 = vmul.f32 %v1030_v24, %v582_v29  ;;  %v592_v60 = vor.u32 1.1754944e-38, %v591_v35  ;;  %v619_v13 = vadd.f32 1.0, %v1508_v1  ;;  %v546_v15 = vsel %vm1765_vm1, %v545_v19, %v541_v42 }
  0xd1   : > { %v569_v52 = vadd.f32 %v1028_v20, %v568_v36  ;;  %v620_v21 = vadd.f32 1.0, %v1510_v2  ;;  %v625_v25 = vmul.f32 %v623_v61, %v621_v37  ;;  %v556_v43 = vsel %vm1812_vm11, %v1746_v58, %v552_v47 }
  0xd2   : > { %v584_v10 = vadd.f32 %v1030_v24, %v583_v44  ;;  %v626_v27 = vmul.f32 %v624_v30, %v622_v39  ;;  %v631_v18 = vadd.f32 5.0, %v1508_v1  ;;  %vm590_vm15 = vcmp.eq.f32.partialorder %v589_v41, 8.507059e+37 }
  0xd3   : > { %v573_v57 = vsel %vm1805_vm10, %v1028_v20, %v569_v52  ;;  %v632_v55 = vadd.f32 5.0, %v1510_v2  ;;  %v633_v19 = vadd.f32 6.0, %v1508_v1  ;;  %v530_v20 = vadd.f32 %v1748_v62, %v1688_v17 }
  0xd4   : > { %v578_v26 = vsel %vm575_vm13, %v577_v45, %v573_v57  ;;  %v588_v31 = vsel %vm1824_vm14, %v1030_v24, %v584_v10  ;;  %v1845_v32 = vadd.f32 5.5, %v1508_v1  ;;  %v629_v58 = vadd.f32 4.0, %v1508_v1 }
  0xd5   : > { %v634_v34 = vadd.f32 6.0, %v1510_v2  ;;  %v547_v35 = vmul.f32 %v546_v15, %v1759_v9  ;;  %v561_v24 = vsel %vm1816_vm12, %v560_v16, %v556_v43  ;;  %v579_v45 = vmul.f32 %v578_v26, %v1755_v11 }
  0xd6   : > { %v1853_v29 = vmul.f32 %v625_v25, %v619_v13  ;;  %v593_v36 = vsel %vm590_vm15, %v592_v60, %v588_v31  ;;  %v1855_v37 = vmul.f32 %v626_v27, %v620_v21  ;;  %v635_v17 = vmul.f32 %v633_v19, %v631_v18 }
  0xd7   : > { %v639_v62 = vmul.f32 13.688869, %v1508_v1  ;;  %1035 = vlog2.f32 %v1743_v53  ;;  %v630_v39 = vadd.f32 4.0, %v1510_v2  ;;  %v636_v61 = vmul.f32 %v634_v34, %v632_v55 }
  0xd8   : > { %v640_v9 = vmul.f32 13.688869, %v1510_v2  ;;  %v1862_v42 = vadd.f32 5.5, %v1510_v2  ;;  %1037 = vlog2.f32 %v1845_v32  ;;  %v562_v11 = vmul.f32 %v561_v24, %v530_v20 }
  0xd9   : > { %v594_v47 = vmul.f32 %v593_v36, %v1757_v14  ;;  %v595_v48 = vadd.f32 %v579_v45, %v547_v35  ;;  %v657_v44 = vmul.f32 %v1853_v29, %v1508_v1  ;;  %v637_v30 = vmul.f32 %v635_v17, %v629_v58 }
  0xda   : > { %v641_v49 = vadd.f32 106.92147, %v639_v62  ;;  %v647_v53 = vmul.f32 -1.2305363, %v1508_v1  ;;  %v1871_v63 = vmul.f32 %v1855_v37, %v1510_v2  ;;  %v638_v52 = vmul.f32 %v636_v61, %v630_v39 }
  0xdb   : > { %v642_v41 = vadd.f32 106.92147, %v640_v9  ;;  %v648_v16 = vmul.f32 -1.2305363, %v1510_v2  ;;  %1039 = vrcp.f32 %v657_v44  ;;  %v1878_v10 = vadd.f32 0.5, %v1518_v5 }
  0xdc   : > { %1041 = vlog2.f32 %v1862_v42  ;;  %v1881_v22 = vadd.f32 0.5, %v1522_v6  ;;  %v1884_v60 = vmul.f32 0.6931472, %v1733_v46  ;;  %v596_v15 = vadd.f32 %v594_v47, %v562_v11 }
  0xdd   : > { %v1875_v14 = vpop.eup %1035  ;;  %1043 = vrcp.f32 %v1871_v63  ;;  %v597_v57 = vmul.f32 2.5066283, %v595_v48  ;;  %v649_v21 = vadd.f32 -13.537097, %v647_v53  ;;  %v1890_v25 = vmul.f32 %v637_v30, %v1508_v1 }
  0xde   : > { %v1887_v13 = vpop.eup %1037  ;;  %v643_v43 = vmul.f32 %v641_v49, %v1508_v1  ;;  %v644_v5 = vmul.f32 %v642_v41, %v1510_v2  ;;  %v650_v26 = vadd.f32 -13.537097, %v648_v16  ;;  %v1895_v6 = vmul.f32 %v638_v52, %v1510_v2 }
  0xdf   : > { %v1898_v46 = vmul.f32 0.6931472, %v1753_v7  ;;  %v1901_v27 = vadd.f32 0.5, %v1576_v50  ;;  %v1904_v18 = vmul.f32 0.6931472, %v1763_v8  ;;  %1045 = vrcp.f32 %v1890_v25 }
  0xe0   : > { %v668_v55 = vand.u32 2147483647, %v657_v44  ;;  %v670_v19 = vand.u32 2147483648, %v657_v44  ;;  %v683_v20 = vand.u32 2147483647, %v1871_v63  ;;  %1047 = vrcp.f32 %v1895_v6 }
  0xe1   : > { %v1040_v31 = vpop.eup %1039  ;;  %v598_v34 = vmul.f32 2.5066283, %v596_v15  ;;  %1049 = vlog2.f32 %v597_v57  ;;  %v685_v50 = vand.u32 2147483648, %v1871_v63  ;;  %v645_v24 = vadd.f32 245.59279, %v643_v43 }
  0xe2   : > { %v1909_v58 = vpop.eup %1041  ;;  %v660_v7 = vmul.f32 %v1040_v31, %v657_v44  ;;  %v646_v8 = vadd.f32 245.59279, %v644_v5  ;;  %v651_v45 = vmul.f32 %v649_v21, %v1508_v1  ;;  %v652_v36 = vmul.f32 %v650_v26, %v1510_v2 }
  0xe3   : > { %v1044_v35 = vpop.eup %1043  ;;  %vm664_vm0 = vweird.f32 %v657_v44  ;;  %vm665_vm1 = vweird.f32 %v1040_v31  ;;  %vm1915_vm2 = vcmp.eq.f32.partialorder %v668_v55, 8.507059e+37  ;;  %v671_v61 = vor.u32 1.1754944e-38, %v670_v19 }
  0xe4   : > { %v661_v17 = vsub.f32 1.0, %v660_v7  ;;  %v675_v62 = vmul.f32 %v1044_v35, %v1871_v63  ;;  %vm679_vm3 = vweird.f32 %v1871_v63  ;;  %vm1920_vm4 = vcmp.eq.f32.partialorder %v683_v20, 8.507059e+37  ;;  %vm1924_vm6 = vmor %vm664_vm0, %vm665_vm1 }
  0xe5   : > { %v1046_v11 = vpop.eup %1045  ;;  %vm680_vm5 = vweird.f32 %v1044_v35  ;;  %v686_v30 = vor.u32 1.1754944e-38, %v685_v50  ;;  %vm696_vm7 = vweird.f32 %v1890_v25  ;;  %v700_v52 = vand.u32 2147483647, %v1890_v25 }
  0xe6   : > { %v662_v47 = vmul.f32 %v1040_v31, %v661_v17  ;;  %v676_v48 = vsub.f32 1.0, %v675_v62  ;;  %v1048_v44 = vpop.eup %1047  ;;  %v692_v53 = vmul.f32 %v1046_v11, %v1890_v25  ;;  %v702_v41 = vand.u32 2147483648, %v1890_v25  ;;  %vm1936_vm9 = vmor %vm679_vm3, %vm680_vm5 }
  0xe7   : > { %v1050_v16 = vpop.eup %1049  ;;  %v707_v21 = vmul.f32 %v1048_v44, %v1895_v6  ;;  %vm711_vm8 = vweird.f32 %v1895_v6  ;;  %vm697_vm10 = vweird.f32 %v1046_v11  ;;  %v715_v26 = vand.u32 2147483647, %v1895_v6 }
  0xe8   : > { %v663_v15 = vadd.f32 %v1040_v31, %v662_v47  ;;  %v677_v57 = vmul.f32 %v1044_v35, %v676_v48  ;;  %v693_v5 = vsub.f32 1.0, %v692_v53  ;;  %v717_v55 = vand.u32 2147483648, %v1895_v6  ;;  %vm1952_vm12 = vmor %vm696_vm7, %vm697_vm10 }
  0xe9   : > { %v708_v7 = vsub.f32 1.0, %v707_v21  ;;  %vm712_vm11 = vweird.f32 %v1048_v44  ;;  %v653_v50 = vadd.f32 -36.923286, %v651_v45  ;;  %v655_v17 = vadd.f32 %v645_v24, %v1853_v29 }
  0xea   : > { %v667_v19 = vsel %vm1924_vm6, %v1040_v31, %v663_v15  ;;  %v678_v20 = vadd.f32 %v1044_v35, %v677_v57  ;;  %v656_v63 = vadd.f32 %v646_v8, %v1855_v37  ;;  %v694_v62 = vmul.f32 %v1046_v11, %v693_v5  ;;  %vm1960_vm14 = vmor %vm711_vm8, %vm712_vm11 }
  0xeb   : > { %v672_v47 = vsel %vm1915_vm2, %v671_v61, %v667_v19  ;;  %v703_v31 = vor.u32 1.1754944e-38, %v702_v41  ;;  %v709_v53 = vmul.f32 %v1048_v44, %v708_v7  ;;  %vm701_vm13 = vcmp.eq.f32.partialorder %v700_v52, 8.507059e+37 }
  0xec   : > { %v682_v48 = vsel %vm1936_vm9, %v1044_v35, %v678_v20  ;;  %v695_v24 = vadd.f32 %v1046_v11, %v694_v62  ;;  %v718_v35 = vor.u32 1.1754944e-38, %v717_v55  ;;  %1051 = vlog2.f32 %v598_v34 }
  0xed   : > { %v687_v29 = vsel %vm1920_vm4, %v686_v30, %v682_v48  ;;  %v654_v25 = vadd.f32 -36.923286, %v652_v36  ;;  %v710_v8 = vadd.f32 %v1048_v44, %v709_v53  ;;  %vm716_vm15 = vcmp.eq.f32.partialorder %v715_v26, 8.507059e+37 }
  0xee   : > { %v484_v45 = vadd.f32 0.5, %v1584_v54  ;;  %v488_v39 = vmul.f32 0.6931472, %v1777_v56  ;;  %v673_v61 = vmul.f32 %v672_v47, %v655_v17  ;;  %v699_v9 = vsel %vm1952_vm12, %v1046_v11, %v695_v24 }
  0xef   : > { %v363_v6 = vmul.f32 %v1884_v60, %v1878_v10  ;;  %v688_v30 = vmul.f32 %v687_v29, %v656_v63  ;;  %v704_v52 = vsel %vm701_vm13, %v703_v31, %v699_v9  ;;  %v714_v41 = vsel %vm1960_vm14, %v1048_v44, %v710_v8 }
  0xf0   : > { %1053 = vlog2.f32 %v1508_v1  ;;  %v364_v34 = vmul.f32 %v1898_v46, %v1881_v22  ;;  %v705_v54 = vmul.f32 %v704_v52, %v653_v50  ;;  %v719_v36 = vsel %vm716_vm15, %v718_v35, %v714_v41 }
  0xf1   : > { %1055 = vlog2.f32 %v1510_v2  ;;  %v489_v56 = vmul.f32 %v1904_v18, %v1901_v27  ;;  %v720_v11 = vmul.f32 %v719_v36, %v654_v25  ;;  %v490_v15 = vmul.f32 %v488_v39, %v484_v45 }
  0xf2   : > { %v721_v10 = vadd.f32 %v705_v54, %v673_v61  ;;  %v1052_v60 = vpop.eup %1051  ;;  %v365_v57 = vsub.f32 %v363_v6, %v1579_v51  ;;  %v609_v44 = vadd.f32 0.5, %v1508_v1  ;;  %v612_v21 = vmul.f32 0.6931472, %v1887_v13 }
  0xf3   : > { %v722_v43 = vadd.f32 %v720_v11, %v688_v30  ;;  %v366_v22 = vsub.f32 %v364_v34, %v1706_v12  ;;  %v610_v46 = vadd.f32 0.5, %v1510_v2  ;;  %v614_v5 = vmul.f32 0.6931472, %v1909_v58 }
  0xf4   : > { %v723_v26 = vmul.f32 2.5066283, %v721_v10  ;;  %v474_v27 = vmul.f32 0.6931472, %v1783_v28  ;;  %v491_v18 = vsub.f32 %v489_v56, %v1714_v33  ;;  %v600_v55 = vmul.f32 0.6931472, %v1050_v16 }
  0xf5   : > { %v724_v19 = vmul.f32 2.5066283, %v722_v43  ;;  %v476_v51 = vmul.f32 0.6931472, %v1875_v14  ;;  %v492_v7 = vsub.f32 %v490_v15, %v1721_v38  ;;  %v602_v13 = vmul.f32 0.6931472, %v1052_v60 }
  0xf6   : > { %v1054_v20 = vpop.eup %1053  ;;  %1057 = vlog2.f32 %v723_v26  ;;  %v340_v12 = vmul.f32 0.6931472, %v1593_v59  ;;  %v350_v17 = vmul.f32 0.6931472, %v1624_v23  ;;  %v615_v58 = vmul.f32 %v612_v21, %v609_v44  ;;  %v762_v26 = vld [vmem:[#allocation8] sm:$0x1] }
  0xf7   : > { %v1056_v50 = vpop.eup %1055  ;;  %1059 = vlog2.f32 %v724_v19  ;;  %v342_v28 = vmul.f32 0.6931472, %v1602_v0  ;;  %v352_v33 = vmul.f32 0.6931472, %v1726_v40  ;;  %v616_v16 = vmul.f32 %v614_v5, %v610_v46 }
  0xf8   : > { %v344_v63 = vmul.f32 0.6931472, %v1054_v20  ;;  %v477_v62 = vadd.f32 %v474_v27, %v365_v57  ;;  %v603_v47 = vadd.f32 %v600_v55, %v491_v18  ;;  %v752_v14 = vlaneseq }
  0xf9   : > { %v346_v48 = vmul.f32 0.6931472, %v1056_v50  ;;  %v478_v38 = vadd.f32 %v476_v51, %v366_v22  ;;  %v604_v49 = vadd.f32 %v602_v13, %v492_v7  ;;  %v617_v31 = vsub.f32 %v615_v58, %v1845_v32 }
  0xfa   : > { %v733_v59 = vsub.f32 %v340_v12, %v350_v17  ;;  %v618_v23 = vsub.f32 %v616_v16, %v1862_v42  ;;  %v734_v29 = vsub.f32 %v342_v28, %v352_v33  ;;  %v605_v0 = vsub.f32 %v477_v62, %v603_v47 }
  0xfb   : > { %v739_v40 = vsub.f32 %v344_v63, %v350_v17  ;;  %v753_v35 = vshrl.u32 %v752_v14, 7  ;;  %v606_v25 = vsub.f32 %v478_v38, %v604_v49  ;;  %v740_v45 = vsub.f32 %v346_v48, %v352_v33 }
  0xfc   : > { %v1058_v53 = vpop.eup %1057  ;;  %v735_v61 = vmul.f32 %v733_v59, %v1512_v3  ;;  %v736_v32 = vmul.f32 %v734_v29, %v1514_v4  ;;  %v755_v52 = vstv %s925_s23 }
  0xfd   : > { %v1060_v24 = vpop.eup %1059  ;;  %v726_v37 = vmul.f32 0.6931472, %v1058_v53  ;;  %v741_v30 = vmul.f32 %v739_v40, %v1508_v1  ;;  %v754_v42 = vadd.s32 8, %v753_v35  ;;  %v742_v34 = vmul.f32 %v740_v45, %v1510_v2 }
  0xfe   : > { %v728_v8 = vmul.f32 0.6931472, %v1060_v24  ;;  %v756_v56 = vadd.s32 %v755_v52, %v753_v35 }
  0xff   : > { %v729_v39 = vadd.f32 %v726_v37, %v617_v31  ;;  %v757_v15 = vadd.s32 %v755_v52, %v754_v42 }
 0x100   : > { %v730_v9 = vadd.f32 %v728_v8, %v618_v23  ;;  %vm758_vm0 = vcmp.lt.s32.totalorder %v756_v56, 40 }
 0x101   : > { %v731_v6 = vsub.f32 %v605_v0, %v729_v39  ;;  %vm759_vm1 = vcmp.lt.s32.totalorder %v757_v15, 40 }
 0x102   : > { %v732_v41 = vsub.f32 %v606_v25, %v730_v9 }
 0x103   : > { %v737_v54 = vadd.f32 %v735_v61, %v731_v6 }
 0x104   : > { %v738_v36 = vadd.f32 %v736_v32, %v732_v41 }
 0x105   : > { %v743_v11 = vadd.f32 %v741_v30, %v737_v54 }
 0x106   : > { %v744_v10 = vadd.f32 %v742_v34, %v738_v36 }
 0x107   : > { %v923_v60 = vclamps-f32 %v743_v11, 300.0 }
 0x108   : > { %v924_v57 = vclamps-f32 %v744_v10, 300.0 }
 0x109   : > { %v749_v3 = vsub.f32 0.0, %v923_v60 }
 0x10a   : > { %v750_v4 = vsub.f32 0.0, %v924_v57 }
 0x10b   : > { %v760_v44 = vsel %vm758_vm0, %v749_v3, 0.0 }
 0x10c   : > { %v761_v1 = vsel %vm759_vm1, %v750_v4, 0.0 }
 0x10d   : > { %v763_v21 = vadd.f32 %v761_v1, %v760_v44 }
 0x10f   : > { %v764_v43 = vrot.slane %v763_v21, 4 }
 0x111   : > { %v765_v22 = vadd.f32 %v764_v43, %v763_v21 }
 0x113   : > { %v766_v46 = vrot.slane %v765_v22, 2 }
 0x115   : > { %v767_v2 = vadd.f32 %v766_v46, %v765_v22 }
 0x117   : > { %v768_v5 = vrot.slane %v767_v2, 1 }
 0x119   : > { %v769_v27 = vadd.f32 %v768_v5, %v767_v2 }
 0x11b   : > { %v770_v18 = vadd.f32 %v769_v27, %v762_v26 }
 0x11d   : > { %771 = vst [vmem:[#allocation8] sm:$0x1] %v770_v18 }
 0x11e   : > { %938 = dma.vmem_to_hbm [thread:$0]  (%p941_p7), %s780_s30, 16, %s782_s6, [#allocation4]  }
 0x11f   : > { %1239 = dma.done.wait (%p941_p7), [#allocation4], 16  }
 0x120   : > { %1241 = vsyncadd (%p941_p7), [#allocation4], 4294967280 }
 0x121 PF: > { %s20_s17 = sadd.s32 1, %s1264_s17   ;;  %s2070_s12 = smov %s1248_s13 }
 0x122   : > { %p17_p11 = scmp.ge.s32.totalorder %s20_s17, 5   ;;  %s2071_s13 = smov %s1252_s14 }
 0x123   : > { %s2072_s14 = smov %s1350_s24  ;;  %s2073_s15 = smov %s1260_s16 }
 0x124   : > { %s2074_s16 = smov %s2076_s19  ;;  %19 = sbr.rel (!%p17_p11) target bundleno = 7 (0x7), region = 98 }
 0x129   :  { %795 = vsyncpa [#allocation3], 1 }
 0x12a   :  { %797 = vsyncpa [#allocation3 + $0x1], 1 }
 0x12b   :  { %798 = vsyncpa [#allocation6], 1 }
 0x12c   :  { %800 = vsyncpa [#allocation6 + $0x1], 1 }
 0x12d   :  { %801 = vsyncpa [#allocation4], 1 }
 0x12e   :  { %803 = vsyncpa [#allocation4 + $0x1], 1 }

</bundles_post_ra>
